<compile_context>
chip_gen: v6e
topology: v6e:2x2x1
jax: 0.10.0
libtpu: 0.0.40
codegen_flags: <defaults>
</compile_context>

<pallas_src>
import jax
import jax.numpy as jnp
from jax import lax
from jax.experimental import pallas as pl
from jax.experimental.pallas import tpu as pltpu


# ---------------------------------------------------------------------------
# Fused self-attention kernel factory.  One program = one batch element x one
# tile of TQ query positions.  Shapes inside the kernel:
#   xf_ref : (C, N_pad)   all columns of x for this batch element (f32)
#   k_sc   : (C//8, N_pad) cached key projection   (bf16 VMEM scratch)
#   v_sc   : (C,    N_pad) cached value projection (bf16 VMEM scratch)
#   o_ref  : (C, TQ)
# ---------------------------------------------------------------------------
def _make_self_attn_kernel(n_real, n_pad, tq):
    needs_mask = (n_real != n_pad)

    def kernel(gamma_ref, xf_ref, wq_ref, bq_ref, wk_ref, bk_ref,
               wv_ref, bv_ref, o_ref, k_sc, v_sc):
        qi = pl.program_id(1)

        # --- K / V projections: once per batch element, cached across qi. ---
        @pl.when(qi == 0)
        def _():
            x_f = xf_ref[...]                                     # (C, N_pad) f32
            k = jnp.dot(wk_ref[...], x_f,
                        preferred_element_type=jnp.float32) + bk_ref[...]
            v = jnp.dot(wv_ref[...], x_f,
                        preferred_element_type=jnp.float32) + bv_ref[...]
            k_sc[...] = k.astype(k_sc.dtype)
            v_sc[...] = v.astype(v_sc.dtype)

        # --- Q projection on this tile's columns (sliced from resident xf). ---
        start = pl.multiple_of(qi * tq, tq)
        x_q = xf_ref[:, pl.ds(start, tq)]                         # (C, TQ) f32
        q = jnp.dot(wq_ref[...], x_q,
                    preferred_element_type=jnp.float32) + bq_ref[...]

        # --- energy[j, i] = sum_c k[c, j] * q[c, i]  -> (N_pad, TQ). ---
        # bf16 MXU operands, f32 accumulation.  Keys on sublanes so that the
        # softmax stats below come out lane-dense as (1, TQ).
        energy = lax.dot_general(k_sc[...], q.astype(jnp.bfloat16),
                                 (((0,), (0,)), ((), ())),
                                 preferred_element_type=jnp.float32)

        # --- softmax over keys (axis 0): f32 max/exp/sum, normalization deferred. ---
        m = jnp.max(energy, axis=0, keepdims=True)                # (1, TQ)
        e = jnp.exp(energy - m)                                   # (N_pad, TQ) f32
        if needs_mask:
            key_idx = lax.broadcasted_iota(jnp.int32, (n_pad, tq), 0)
            e = jnp.where(key_idx < n_real, e, 0.0)               # zero padded keys
        s = jnp.sum(e, axis=0, keepdims=True)                     # (1, TQ)

        # --- out_un[c, i] = sum_j v[c, j] * e[j, i]  -> (C, TQ). ---
        out_un = lax.dot_general(v_sc[...], e.astype(jnp.bfloat16),
                                 (((1,), (0,)), ((), ())),
                                 preferred_element_type=jnp.float32)

        inv = pl.reciprocal(s, approx=True)                       # (1, TQ), EUP slot
        o_ref[...] = (gamma_ref[0] * (out_un * inv) + x_q).astype(o_ref.dtype)

    return kernel


# ---------------------------------------------------------------------------
# Parameter init: 1x1-conv weights already squeezed to 2-D (Cout, Cin) and
# biases shaped (Cout, 1) so no per-forward reshapes/transposes are needed.
# gamma defaults to 0.0, matching nn.Parameter(torch.zeros(1)).
# ---------------------------------------------------------------------------
def init_self_attn_params(key, in_dim, gamma=0.0):
    c8 = in_dim // 8
    ks = jax.random.split(key, 6)
    std = 0.05
    return {
        "wq": std * jax.random.normal(ks[0], (c8, in_dim), jnp.float32),
        "bq": std * jax.random.normal(ks[1], (c8, 1), jnp.float32),
        "wk": std * jax.random.normal(ks[2], (c8, in_dim), jnp.float32),
        "bk": std * jax.random.normal(ks[3], (c8, 1), jnp.float32),
        "wv": std * jax.random.normal(ks[4], (in_dim, in_dim), jnp.float32),
        "bv": std * jax.random.normal(ks[5], (in_dim, 1), jnp.float32),
        "gamma": jnp.full((1,), gamma, jnp.float32),
    }


# ---------------------------------------------------------------------------
# Forward wrapper: NCHW in, NCHW out (matches the PyTorch module's `out`).
# ---------------------------------------------------------------------------
def self_attn_forward(params, x):
    B, C, Wd, Hd = x.shape
    N = Wd * Hd
    C8 = params["wq"].shape[0]

    # Pad the spatial axis up to a multiple of 128 (lane-dense tiles); the
    # padded key columns are masked out inside the kernel and padded query
    # columns are sliced off below.
    n_pad = ((N + 127) // 128) * 128
    # Bigger query tiles amortize grid-step overhead on v6e/v5e; keep 128–256
    # so the (n_pad, TQ) energy tile also fits v7x's 64 MiB VMEM.
    tq = 256 if (n_pad >= 2048 and n_pad % 256 == 0) else 128

    xf = x.reshape(B, C, N).astype(jnp.float32)
    if n_pad != N:
        xf = jnp.pad(xf, ((0, 0), (0, 0), (0, n_pad - N)))

    kernel = _make_self_attn_kernel(N, n_pad, tq)
    grid = (B, n_pad // tq)

    # Rough VMEM budget; only raise the scoped limit when it is actually
    # needed (large SAGAN shapes), leaving headroom for v7x's 64 MiB VMEM.
    vmem_est = (2 * C * n_pad * 4            # x slab (double-buffered)
                + 2 * C * tq * 4             # output tile (double-buffered)
                + (C8 + C) * n_pad * 2       # bf16 K/V scratch
                + 3 * n_pad * tq * 4         # energy / exp intermediates
                + 2 * (C8 * C + C * C + C8 + C) * 4)
    cp_kwargs = dict(dimension_semantics=("parallel", "arbitrary"))
    if vmem_est > (32 << 20):
        cp_kwargs["vmem_limit_bytes"] = min(int(1.25 * vmem_est), 100 << 20)

    out = pl.pallas_call(
        kernel,
        out_shape=jax.ShapeDtypeStruct((B, C, n_pad), jnp.float32),
        grid=grid,
        in_specs=[
            pl.BlockSpec(memory_space=pltpu.MemorySpace.SMEM),        # gamma (1,)
            pl.BlockSpec((None, C, n_pad), lambda b, qi: (b, 0, 0)),  # x slab (per-batch)
            pl.BlockSpec((C8, C), lambda b, qi: (0, 0)),              # wq
            pl.BlockSpec((C8, 1), lambda b, qi: (0, 0)),              # bq
            pl.BlockSpec((C8, C), lambda b, qi: (0, 0)),              # wk
            pl.BlockSpec((C8, 1), lambda b, qi: (0, 0)),              # bk
            pl.BlockSpec((C, C),  lambda b, qi: (0, 0)),              # wv
            pl.BlockSpec((C, 1),  lambda b, qi: (0, 0)),              # bv
        ],
        out_specs=pl.BlockSpec((None, C, tq), lambda b, qi: (b, 0, qi)),
        scratch_shapes=[
            pltpu.VMEM((C8, n_pad), jnp.bfloat16),   # cached K
            pltpu.VMEM((C, n_pad), jnp.bfloat16),    # cached V
        ],
        compiler_params=pltpu.CompilerParams(**cp_kwargs),
    )(params["gamma"], xf,
      params["wq"], params["bq"], params["wk"], params["bk"],
      params["wv"], params["bv"])

    if n_pad != N:
        out = out[:, :, :N]
    return out.reshape(B, C, Wd, Hd)


# ---------------------------------------------------------------------------
# Pure-JAX reference (mirrors the PyTorch forward exactly), for validation.
# ---------------------------------------------------------------------------
def self_attn_reference(params, x):
    B, C, Wd, Hd = x.shape
    N = Wd * Hd
    xf = x.reshape(B, C, N)
    hi = lax.Precision.HIGHEST
    q = jnp.einsum("oc,bcn->bon", params["wq"], xf, precision=hi) + params["bq"][None]
    k = jnp.einsum("oc,bcn->bon", params["wk"], xf, precision=hi) + params["bk"][None]
    v = jnp.einsum("oc,bcn->bon", params["wv"], xf, precision=hi) + params["bv"][None]
    energy = jnp.einsum("bci,bcj->bij", q, k, precision=hi)
    att = jax.nn.softmax(energy, axis=-1)
    out = jnp.einsum("bcj,bij->bci", v, att, precision=hi)
    out = params["gamma"][0] * out + xf
    return out.reshape(B, C, Wd, Hd)


if __name__ == "__main__":
    key = jax.random.PRNGKey(0)
    kp1, kx1, kp2, kx2 = jax.random.split(key, 4)

    # --- Case 1: lane-aligned spatial size (N = 256 is a multiple of 128). ---
    B, C, Wd, Hd = 2, 32, 16, 16             # in_dim=32 -> C//8 = 4, N = 256
    # gamma nonzero here (PyTorch inits it to 0) so the attention path is
    # actually exercised by the numeric check.
    params = init_self_attn_params(kp1, C, gamma=0.5)
    x = jax.random.normal(kx1, (B, C, Wd, Hd), jnp.float32)

    fwd = jax.jit(self_attn_forward)
    out = jax.block_until_ready(fwd(params, x))
    assert out.shape == (B, C, Wd, Hd), out.shape
    assert bool(jnp.all(jnp.isfinite(out)))

    ref = self_attn_reference(params, x)
    err = float(jnp.max(jnp.abs(out - ref)))
    tol = 2e-2 * max(1.0, float(jnp.max(jnp.abs(ref))))   # bf16 MXU + approx recip
    assert err <= tol, f"case1 max abs error {err} > tol {tol}"

    # --- Case 2: N = 144 (not a multiple of 128) exercises the padded/masked path. ---
    B2, C2, W2, H2 = 1, 16, 12, 12           # in_dim=16 -> C//8 = 2, N = 144
    params2 = init_self_attn_params(kp2, C2, gamma=0.25)
    x2 = jax.random.normal(kx2, (B2, C2, W2, H2), jnp.float32)
    out2 = jax.block_until_ready(jax.jit(self_attn_forward)(params2, x2))
    assert out2.shape == (B2, C2, W2, H2), out2.shape
    ref2 = self_attn_reference(params2, x2)
    err2 = float(jnp.max(jnp.abs(out2 - ref2)))
    tol2 = 2e-2 * max(1.0, float(jnp.max(jnp.abs(ref2))))
    assert err2 <= tol2, f"case2 max abs error {err2} > tol {tol2}"

    print("KERNEL_OK")
</pallas_src>

<mosaic_0001>
module attributes {stable_mosaic.version = 11 : i64} {
  func.func @kernel(%arg0: i32, %arg1: i32, %arg2: memref<1xf32, #tpu.memory_space<smem>>, %arg3: memref<1x32x256xf32, #tpu.memory_space<vmem>>, %arg4: memref<4x32xf32, #tpu.memory_space<vmem>>, %arg5: memref<4x1xf32, #tpu.memory_space<vmem>>, %arg6: memref<4x32xf32, #tpu.memory_space<vmem>>, %arg7: memref<4x1xf32, #tpu.memory_space<vmem>>, %arg8: memref<32x32xf32, #tpu.memory_space<vmem>>, %arg9: memref<32x1xf32, #tpu.memory_space<vmem>>, %arg10: memref<1x32x128xf32, #tpu.memory_space<vmem>>, %arg11: memref<4x256xbf16, #tpu.memory_space<vmem>>, %arg12: memref<32x256xbf16, #tpu.memory_space<vmem>>) attributes {dimension_semantics = [#tpu.dimension_semantics<parallel>, #tpu.dimension_semantics<arbitrary>], iteration_bounds = array<i64: 2, 2>, scalar_prefetch = 0 : i64, scratch_operands = 2 : i64, tpu.core_type = #tpu.core_type<tc>, window_params = [{transform_indices = @transform_0, window_bounds = array<i64: 1>}, {transform_indices = @transform_1, window_bounds = array<i64: 1, 32, 256>}, {pipeline_mode = #tpu.pipeline_mode<synchronous>, transform_indices = @transform_2, window_bounds = array<i64: 4, 32>}, {pipeline_mode = #tpu.pipeline_mode<synchronous>, transform_indices = @transform_3, window_bounds = array<i64: 4, 1>}, {pipeline_mode = #tpu.pipeline_mode<synchronous>, transform_indices = @transform_4, window_bounds = array<i64: 4, 32>}, {pipeline_mode = #tpu.pipeline_mode<synchronous>, transform_indices = @transform_5, window_bounds = array<i64: 4, 1>}, {pipeline_mode = #tpu.pipeline_mode<synchronous>, transform_indices = @transform_6, window_bounds = array<i64: 32, 32>}, {pipeline_mode = #tpu.pipeline_mode<synchronous>, transform_indices = @transform_7, window_bounds = array<i64: 32, 1>}, {transform_indices = @transform_8, window_bounds = array<i64: 1, 32, 128>}]} {
    %c0_i32 = arith.constant 0 : i32
    %0 = arith.cmpi eq, %arg1, %c0_i32 : i32
    %1 = arith.extui %0 : i1 to i32
    %c0_i32_0 = arith.constant 0 : i32
    %2 = arith.cmpi ne, %1, %c0_i32_0 : i32
    scf.if %2 {
      %c0_18 = arith.constant 0 : index
      %c0_19 = arith.constant 0 : index
      %c0_20 = arith.constant 0 : index
      %36 = vector.load %arg3[%c0_18, %c0_19, %c0_20] : memref<1x32x256xf32, #tpu.memory_space<vmem>>, vector<1x32x256xf32>
      %37 = vector.shape_cast %36 : vector<1x32x256xf32> to vector<32x256xf32>
      %c0_21 = arith.constant 0 : index
      %c0_22 = arith.constant 0 : index
      %38 = vector.load %arg6[%c0_21, %c0_22] : memref<4x32xf32, #tpu.memory_space<vmem>>, vector<4x32xf32>
      %cst_23 = arith.constant dense<0.000000e+00> : vector<4x256xf32>
      %39 = tpu.matmul %38, %37, %cst_23 {dimension_numbers = #tpu.dot_dimension_numbers<[1], [0], [0], [1], [0, 0, 1, 1], [], []>} : vector<4x32xf32>, vector<32x256xf32>, vector<4x256xf32> -> vector<4x256xf32>
      %c0_24 = arith.constant 0 : index
      %c0_25 = arith.constant 0 : index
      %40 = vector.load %arg7[%c0_24, %c0_25] : memref<4x1xf32, #tpu.memory_space<vmem>>, vector<4x1xf32>
      %41 = vector.broadcast %40 : vector<4x1xf32> to vector<4x256xf32>
      %42 = arith.addf %39, %41 : vector<4x256xf32>
      %c0_26 = arith.constant 0 : index
      %c0_27 = arith.constant 0 : index
      %43 = vector.load %arg8[%c0_26, %c0_27] : memref<32x32xf32, #tpu.memory_space<vmem>>, vector<32x32xf32>
      %cst_28 = arith.constant dense<0.000000e+00> : vector<32x256xf32>
      %44 = tpu.matmul %43, %37, %cst_28 {dimension_numbers = #tpu.dot_dimension_numbers<[1], [0], [0], [1], [0, 0, 1, 1], [], []>} : vector<32x32xf32>, vector<32x256xf32>, vector<32x256xf32> -> vector<32x256xf32>
      %c0_29 = arith.constant 0 : index
      %c0_30 = arith.constant 0 : index
      %45 = vector.load %arg9[%c0_29, %c0_30] : memref<32x1xf32, #tpu.memory_space<vmem>>, vector<32x1xf32>
      %46 = vector.broadcast %45 : vector<32x1xf32> to vector<32x256xf32>
      %47 = arith.addf %44, %46 : vector<32x256xf32>
      %48 = arith.truncf %42 : vector<4x256xf32> to vector<4x256xbf16>
      %c0_31 = arith.constant 0 : index
      %c0_32 = arith.constant 0 : index
      %49 = vector.load %arg11[%c0_31, %c0_32] : memref<4x256xbf16, #tpu.memory_space<vmem>>, vector<4x256xbf16>
      tpu.vector_store %arg11[%c0_31, %c0_32], %48 {strides = array<i32>} : memref<4x256xbf16, #tpu.memory_space<vmem>>, vector<4x256xbf16>,
      %50 = arith.truncf %47 : vector<32x256xf32> to vector<32x256xbf16>
      %c0_33 = arith.constant 0 : index
      %c0_34 = arith.constant 0 : index
      %51 = vector.load %arg12[%c0_33, %c0_34] : memref<32x256xbf16, #tpu.memory_space<vmem>>, vector<32x256xbf16>
      tpu.vector_store %arg12[%c0_33, %c0_34], %50 {strides = array<i32>} : memref<32x256xbf16, #tpu.memory_space<vmem>>, vector<32x256xbf16>,
    } else {
    }
    %c128_i32 = arith.constant 128 : i32
    %3 = arith.muli %arg1, %c128_i32 : i32
    %4 = tpu.assume_multiple %3, 128 : i32
    %c0 = arith.constant 0 : index
    %c0_1 = arith.constant 0 : index
    %5 = arith.index_cast %4 : i32 to index
    %6 = vector.load %arg3[%c0, %c0_1, %5] : memref<1x32x256xf32, #tpu.memory_space<vmem>>, vector<1x32x128xf32>
    %7 = vector.shape_cast %6 : vector<1x32x128xf32> to vector<32x128xf32>
    %c0_2 = arith.constant 0 : index
    %c0_3 = arith.constant 0 : index
    %8 = vector.load %arg4[%c0_2, %c0_3] : memref<4x32xf32, #tpu.memory_space<vmem>>, vector<4x32xf32>
    %cst = arith.constant dense<0.000000e+00> : vector<4x128xf32>
    %9 = tpu.matmul %8, %7, %cst {dimension_numbers = #tpu.dot_dimension_numbers<[1], [0], [0], [1], [0, 0, 1, 1], [], []>} : vector<4x32xf32>, vector<32x128xf32>, vector<4x128xf32> -> vector<4x128xf32>
    %c0_4 = arith.constant 0 : index
    %c0_5 = arith.constant 0 : index
    %10 = vector.load %arg5[%c0_4, %c0_5] : memref<4x1xf32, #tpu.memory_space<vmem>>, vector<4x1xf32>
    %11 = vector.broadcast %10 : vector<4x1xf32> to vector<4x128xf32>
    %12 = arith.addf %9, %11 : vector<4x128xf32>
    %c0_6 = arith.constant 0 : index
    %c0_7 = arith.constant 0 : index
    %13 = vector.load %arg11[%c0_6, %c0_7] : memref<4x256xbf16, #tpu.memory_space<vmem>>, vector<4x256xbf16>
    %14 = arith.truncf %12 : vector<4x128xf32> to vector<4x128xbf16>
    %cst_8 = arith.constant dense<0.000000e+00> : vector<256x128xf32>
    %15 = tpu.matmul %13, %14, %cst_8 {dimension_numbers = #tpu.dot_dimension_numbers<[0], [0], [1], [1], [0, 1, 1, 1], [], []>} : vector<4x256xbf16>, vector<4x128xbf16>, vector<256x128xf32> -> vector<256x128xf32>
    %cst_9 = arith.constant dense<0xFF800000> : vector<128xf32>
    %16 = vector.multi_reduction <maximumf>, %15, %cst_9 [0] : vector<256x128xf32> to vector<128xf32>
    %17 = vector.shape_cast %16 : vector<128xf32> to vector<1x128xf32>
    %18 = vector.broadcast %17 : vector<1x128xf32> to vector<256x128xf32>
    %19 = arith.subf %15, %18 : vector<256x128xf32>
    %20 = math.exp %19 : vector<256x128xf32>
    %cst_10 = arith.constant dense<0.000000e+00> : vector<128xf32>
    %21 = vector.multi_reduction <add>, %20, %cst_10 [0] : vector<256x128xf32> to vector<128xf32>
    %22 = vector.shape_cast %21 : vector<128xf32> to vector<1x128xf32>
    %c0_11 = arith.constant 0 : index
    %c0_12 = arith.constant 0 : index
    %23 = vector.load %arg12[%c0_11, %c0_12] : memref<32x256xbf16, #tpu.memory_space<vmem>>, vector<32x256xbf16>
    %24 = arith.truncf %20 : vector<256x128xf32> to vector<256x128xbf16>
    %cst_13 = arith.constant dense<0.000000e+00> : vector<32x128xf32>
    %25 = tpu.matmul %23, %24, %cst_13 {dimension_numbers = #tpu.dot_dimension_numbers<[1], [0], [0], [1], [0, 0, 1, 1], [], []>} : vector<32x256xbf16>, vector<256x128xbf16>, vector<32x128xf32> -> vector<32x128xf32>
    %26 = tpu.reciprocal %22 {approx = true} : vector<1x128xf32> -> vector<1x128xf32>
    %c0_14 = arith.constant 0 : index
    %27 = memref.load %arg2[%c0_14] : memref<1xf32, #tpu.memory_space<smem>>
    %28 = vector.broadcast %26 : vector<1x128xf32> to vector<32x128xf32>
    %29 = arith.mulf %25, %28 : vector<32x128xf32>
    %30 = vector.broadcast %27 : f32 to vector<32x128xf32>
    %31 = arith.mulf %30, %29 : vector<32x128xf32>
    %32 = arith.addf %31, %7 : vector<32x128xf32>
    %c0_15 = arith.constant 0 : index
    %c0_16 = arith.constant 0 : index
    %c0_17 = arith.constant 0 : index
    %33 = vector.load %arg10[%c0_15, %c0_16, %c0_17] : memref<1x32x128xf32, #tpu.memory_space<vmem>>, vector<1x32x128xf32>
    %34 = vector.shape_cast %33 : vector<1x32x128xf32> to vector<32x128xf32>
    %35 = vector.shape_cast %32 : vector<32x128xf32> to vector<1x32x128xf32>
    tpu.vector_store %arg10[%c0_15, %c0_16, %c0_17], %35 {strides = array<i32>} : memref<1x32x128xf32, #tpu.memory_space<vmem>>, vector<1x32x128xf32>,
    return
  }
  func.func @transform_0(%arg0: i32, %arg1: i32) -> i32 {
    %c0_i32 = arith.constant 0 : i32
    %c0_i32_0 = arith.constant 0 : i32
    return %c0_i32 : i32
  }
  func.func @transform_1(%arg0: i32, %arg1: i32) -> (i32, i32, i32) {
    %c0_i32 = arith.constant 0 : i32
    %c0_i32_0 = arith.constant 0 : i32
    %c0_i32_1 = arith.constant 0 : i32
    return %arg0, %c0_i32, %c0_i32_0 : i32, i32, i32
  }
  func.func @transform_2(%arg0: i32, %arg1: i32) -> (i32, i32) {
    %c0_i32 = arith.constant 0 : i32
    %c0_i32_0 = arith.constant 0 : i32
    %c0_i32_1 = arith.constant 0 : i32
    return %c0_i32, %c0_i32_0 : i32, i32
  }
  func.func @transform_3(%arg0: i32, %arg1: i32) -> (i32, i32) {
    %c0_i32 = arith.constant 0 : i32
    %c0_i32_0 = arith.constant 0 : i32
    %c0_i32_1 = arith.constant 0 : i32
    return %c0_i32, %c0_i32_0 : i32, i32
  }
  func.func @transform_4(%arg0: i32, %arg1: i32) -> (i32, i32) {
    %c0_i32 = arith.constant 0 : i32
    %c0_i32_0 = arith.constant 0 : i32
    %c0_i32_1 = arith.constant 0 : i32
    return %c0_i32, %c0_i32_0 : i32, i32
  }
  func.func @transform_5(%arg0: i32, %arg1: i32) -> (i32, i32) {
    %c0_i32 = arith.constant 0 : i32
    %c0_i32_0 = arith.constant 0 : i32
    %c0_i32_1 = arith.constant 0 : i32
    return %c0_i32, %c0_i32_0 : i32, i32
  }
  func.func @transform_6(%arg0: i32, %arg1: i32) -> (i32, i32) {
    %c0_i32 = arith.constant 0 : i32
    %c0_i32_0 = arith.constant 0 : i32
    %c0_i32_1 = arith.constant 0 : i32
    return %c0_i32, %c0_i32_0 : i32, i32
  }
  func.func @transform_7(%arg0: i32, %arg1: i32) -> (i32, i32) {
    %c0_i32 = arith.constant 0 : i32
    %c0_i32_0 = arith.constant 0 : i32
    %c0_i32_1 = arith.constant 0 : i32
    return %c0_i32, %c0_i32_0 : i32, i32
  }
  func.func @transform_8(%arg0: i32, %arg1: i32) -> (i32, i32, i32) {
    %c0_i32 = arith.constant 0 : i32
    %c0_i32_0 = arith.constant 0 : i32
    return %arg0, %c0_i32, %arg1 : i32, i32, i32
  }
}

</mosaic_0001>

<bundles_post_ra>
// kernel: self_attn_forward.1
= control target key start
LH: loop header
LB: loop body
LE: loop exit
PB: predicated region body
PF: predicated region fallthrough
CT: control target
= control target key end

     0   :  { %s2153_s0 = inlined_call_operand.<no memory space> [shape: f32[1], index: 0, kind: input, shape index: {}]   ;;  %s2154_s1 = inlined_call_operand.vmem [shape: f32[2,32,256], index: 1, kind: input, shape index: {}]   ;;  %s2155_s2 = inlined_call_operand.vmem [shape: f32[4,32], index: 2, kind: input, shape index: {}]   ;;  %s2156_s3 = inlined_call_operand.vmem [shape: f32[4,1], index: 3, kind: input, shape index: {}]   ;;  %s2157_s4 = inlined_call_operand.vmem [shape: f32[4,32], index: 4, kind: input, shape index: {}]   ;;  %s2158_s5 = inlined_call_operand.vmem [shape: f32[4,1], index: 5, kind: input, shape index: {}]   ;;  %s2159_s6 = inlined_call_operand.vmem [shape: f32[32,32], index: 6, kind: input, shape index: {}]   ;;  %s2160_s7 = inlined_call_operand.vmem [shape: f32[32,1], index: 7, kind: input, shape index: {}]   ;;  %s2161_s8 = inlined_call_operand.vmem [shape: f32[2,32,256], index: 8, kind: output, shape index: {}]  }
   0x1   :  { %13 = sst [smem:[#allocation4]] %s2153_s0 }
   0x2   :  { %s1733_s29 = smov 0   ;;  %s1735_s30 = smov 0  }
   0x3   :  { %s1737_s9 = smov 0   ;;  %s1739_s10 = smov 0  }
   0x4   :  { %s1741_s11 = smov 0   ;;  %s1743_s12 = smov 0  }
   0x5   :  { %s1745_s13 = smov 0  }
   0x6 LB: > { %s28_s0 = sadd.s32 1, %s1670_s11  ;;  %s31_s14 = sadd.s32 1, %s1674_s12  ;;  %s1678_s13 = sphi %s1745_s13, %s19_s13   ;;  %s1674_s12 = sphi %s1743_s12, %s2168_s12   ;;  %s1670_s11 = sphi %s1741_s11, %s2167_s11   ;;  %s1666_s10 = sphi %s1739_s10, %s2166_s10   ;;  %s1662_s9 = sphi %s1737_s9, %s2165_s9   ;;  %s1658_s30 = sphi %s1735_s30, %s2164_s30   ;;  %s1654_s29 = sphi %s1733_s29, %s2163_s29  }
   0x7   : > { %p29_p0 = scmp.ge.s32.totalorder %s28_s0, 2  ;;  %s1330_s15 = sadd.s32 4294967295, %s1678_s13  }
   0x8   : > { %p223_p1 = scmp.ne.s32.totalorder %s1658_s30, %s1654_s29  ;;  %p224_p2 = scmp.eq.s32.totalorder %s1330_s15, 3 }
   0x9   : > { %s2170_s0 = smov (%p29_p0, %s28_s0), 0  ;;  %s2172_s14 = smov (!%p29_p0, %s31_s14), %s1674_s12 }
   0xa   : > { %s209_s16 = ssub.s32 %s1670_s11, %s2170_s0  ;;  %p33_p3 = scmp.ge.s32.totalorder %s2172_s14, 2 }
   0xb   : > { %p1334_p4 = scmp.ge.s32.totalorder %s1678_s13, 1  ;;  %p1779_p5 = por %p224_p2, %p223_p1 }
   0xc   : > { %p277_p6 = scmp.lt.s32.totalorder %s1678_s13, 5  ;;  %s2174_s14 = smov (%p33_p3, %s2172_s14), 0 }
   0xd   : > { %s208_s18 = ssub.s32 %s1674_s12, %s2174_s14  ;;  %s213_s20 = sadd.s32 1, %s1658_s30 }
   0xe   : > { %p278_p7 = pnand %p1334_p4, %p277_p6  ;;  %s210_s19 = sor.u32 %s209_s16, %s208_s18 }
   0xf   : > { %p211_p8 = scmp.eq.s32.totalorder %s210_s19, 0  ;;  %s307_s22 = sand.u32 (!%p278_p7), 1, %s1654_s29  }
  0x10   : > { %281 = sbr.rel (%p278_p7) target bundleno = 1031 (0x407), region = 52  ;;  %p310_p9 = scmp.lt.s32.totalorder (!%p278_p7), %s1666_s10, 1 }
  0x11   : > { %s1790_s21 = scalar_select %p211_p8, %s1658_s30, %s213_s20  }
  0x12   : > { %s1335_s23 = sshll.u32 (!%p278_p7), %s307_s22, 5  ;;  %p1338_p10 = scmp.ne.s32.totalorder (!%p278_p7), %s1662_s9, 0 }
  0x13   : > { %s1800_s15 = scalar_lea.vmem (!%p278_p7), [#allocation5], %s1335_s23 }
  0x15   : > { %s311_s24 = scalar_select %p310_p9, %s1666_s10, 1 }
  0x16   : > { %319 = sbr.rel (%p1338_p10) target bundleno = 246 (0xf6), region = 56 }
  0x17   : > { %s1379_s25 = sshll.u32 %s311_s24, 6 }
  0x18   : > { %s1798_s28 = scalar_lea.vmem %s2154_s1, %s1379_s25 }
  0x1b   : > { %v327_v0 = vld [vmem:[%s1798_s28 + $0x38] sm:$0xff]  ;;  %v326_v1 = vld [vmem:[%s1798_s28 + $0x30] sm:$0xff]  ;;  %v325_v2 = vld [vmem:[%s1798_s28 + $0x28] sm:$0xff]  ;;  %vm335_vm0 = vcmask 261120   ;;  %v1680_v9 = vmov 0.0   ;;  %v1681_v12 = vmov 0  }
  0x1c   : > { %363 = vmatprep.subr.mxu0 %v327_v0  ;;  %1479 = vmatprep.subr.mxu1 %v327_v0  ;;  %v324_v3 = vld [vmem:[%s1798_s28 + $0x20] sm:$0xff]  ;;  %v323_v4 = vld [vmem:[%s1798_s28 + $0x18] sm:$0xff]  ;;  %v322_v5 = vld [vmem:[%s1798_s28 + $0x10] sm:$0xff] }
  0x1d   : > { %364 = vmatpush1.msra.mxu0 %v326_v1  ;;  %1483 = vmatpush1.msra.mxu1 %v326_v1  ;;  %v321_v6 = vld [vmem:[%s1798_s28 + $0x8] sm:$0xff]  ;;  %v320_v7 = vld [vmem:[%s1798_s28] sm:$0xff]  ;;  %v412_v11 = vld [vmem:[%s2159_s6 + $0x10] sm:$0xff] }
  0x1e   : > { %365 = vmatprep.subr.mxu0 %v325_v2  ;;  %1480 = vmatprep.subr.mxu1 %v325_v2  ;;  %v328_v8 = vld [vmem:[%s2157_s4] sm:$0xf]  ;;  %v411_v10 = vld [vmem:[%s2159_s6 + $0x8] sm:$0xff]  ;;  %v413_v15 = vld [vmem:[%s2159_s6 + $0x18] sm:$0xff] }
  0x1f   : > { %366 = vmatpush1.msra.mxu0 %v324_v3  ;;  %1484 = vmatpush1.msra.mxu1 %v324_v3  ;;  %v329_v13 = vld [vmem:[%s2158_s5] sm:$0xf]  ;;  %v415_v16 = vld [vmem:[%s2160_s7 + $0x8] sm:$0xff]  ;;  %v416_v18 = vld [vmem:[%s2160_s7 + $0x10] sm:$0xff] }
  0x20   : > { %367 = vmatprep.subr.mxu0 %v323_v4  ;;  %1481 = vmatprep.subr.mxu1 %v323_v4  ;;  %v410_v14 = vld [vmem:[%s2159_s6] sm:$0xff]  ;;  %v417_v19 = vld [vmem:[%s2160_s7 + $0x18] sm:$0xff] }
  0x21   : > { %368 = vmatpush1.msra.mxu0 %v322_v5  ;;  %1485 = vmatpush1.msra.mxu1 %v322_v5  ;;  %v414_v17 = vld [vmem:[%s2160_s7] sm:$0xff] }
  0x22   : > { %369 = vmatprep.subr.mxu0 %v321_v6  ;;  %1482 = vmatprep.subr.mxu1 %v321_v6 }
  0x23   : > { %370 = vmatpush1.msra.mxu0 %v320_v7  ;;  %403 = vmatprep.mubr.f32.mxu0 %v1680_v9 }
  0x24   : > { %1486 = vmatpush1.msra.mxu1 %v320_v7  ;;  %520 = vmatprep.mubr.f32.mxu1 %v1680_v9 }
  0x25   : > { %1339 = vmatmul.mubr.msk.f32.vlgmr.msra.gmra.mxu0 %vm335_vm0, %v328_v8  ;;  %474 = vmatprep.subr.mxu0 %v327_v0 }
  0x26   : > { %1341 = vmatmul.mubr.msk.f32.vlgmr.msra.gmra.mxu1 %vm335_vm0, %v411_v10  ;;  %475 = vmatpush1.msra.mxu0 %v326_v1 }
  0x27   : > { %476 = vmatprep.subr.mxu0 %v325_v2  ;;  %526 = vmatprep.mubr.f32.mxu1 %v1680_v9 }
  0x28   : > { %477 = vmatpush1.msra.mxu0 %v324_v3  ;;  %514 = vmatprep.mubr.f32.mxu0 %v1680_v9 }
  0x29   : > { %478 = vmatprep.subr.mxu0 %v323_v4  ;;  %1549 = vset.pattern.permute.xlu0 %v1681_v12 }
  0x2a   : > { %1342 = vmatmul.mubr.msk.f32.gmra.mxu1 %vm335_vm0, %v412_v11  ;;  %479 = vmatpush1.msra.mxu0 %v322_v5 }
  0x2b   : > { %480 = vmatprep.subr.mxu0 %v321_v6  ;;  %532 = vmatprep.mubr.f32.mxu1 %v1680_v9 }
  0x2c   : > { %481 = vmatpush1.msra.mxu0 %v320_v7  ;;  %332 = vperm.xlu0 %1549, %v329_v13  }
  0x2d   : > { %1340 = vmatmul.mubr.msk.f32.vlgmr.msra.gmra.mxu0 %vm335_vm0, %v410_v14  ;;  %1550 = vset.pattern.permute.xlu1 %v1681_v12 }
  0x2e   : > { %1343 = vmatmul.mubr.msk.f32.gmra.mxu1 %vm335_vm0, %v413_v15  ;;  %425 = vperm.xlu1 %1550, %v415_v16  }
  0x30   : > { %420 = vperm.xlu0 %1549, %v414_v17  }
  0x32   : > { %430 = vperm.xlu1 %1550, %v416_v18  }
  0x34   : > { %435 = vperm.xlu0 %1549, %v417_v19  }
  0xa7   : > { %v333_v20 = vpop.permute.xlu0 %332 }
  0xa9   : > { %v426_v21 = vpop.permute.xlu1 %425 }
  0xab   : > { %v421_v28 = vpop.permute.xlu0 %420 }
  0xad   : > { %v431_v32 = vpop.permute.xlu1 %430 }
  0xaf   : > { %v436_v42 = vpop.permute.xlu0 %435 }
  0xe5   : > { %v405_v22 = vpop.f32.mrf.mxu0 }
  0xe6   : > { %v406_v23 = vadd.f32 %v405_v22, %v333_v20  ;;  %v522_v24 = vpop.f32.mrf.mxu1 }
  0xe7   : > { %v407_v25 = vpop.f32.mrf.mxu0  ;;  %v523_v29 = vadd.f32 %v522_v24, %v426_v21 }
  0xe8   : > { %v408_v26 = vadd.f32 %v407_v25, %v333_v20  ;;  %v524_v27 = vpop.f32.mrf.mxu1 }
  0xe9   : > { %v525_v30 = vadd.f32 %v524_v27, %v426_v21 }
  0xea   : > { %v1344_v31 = vpack.c.bf16 %v408_v26, %v406_v23  ;;  %v528_v33 = vpop.f32.mrf.mxu1 }
  0xeb   : > { %v1381_v34 = vpack.c.bf16 %v525_v30, %v523_v29  ;;  %v529_v36 = vadd.f32 %v528_v33, %v431_v32 }
  0xec   : > { %1345 = vst.sshfl [vmem:[#allocation2] sm:$0x33 pattern:$0x76325410] %v1344_v31  ;;  %v530_v35 = vpop.f32.mrf.mxu1 }
  0xed   : > { %578 = vst [vmem:[#allocation3] sm:$0xff] %v1381_v34  ;;  %v531_v37 = vadd.f32 %v530_v35, %v431_v32  ;;  %v516_v38 = vpop.f32.mrf.mxu0 }
  0xee   : > { %v534_v39 = vpop.f32.mrf.mxu1  ;;  %v517_v43 = vadd.f32 %v516_v38, %v421_v28 }
  0xef   : > { %v1382_v40 = vpack.c.bf16 %v531_v37, %v529_v36  ;;  %v518_v41 = vpop.f32.mrf.mxu0  ;;  %v535_v46 = vadd.f32 %v534_v39, %v436_v42 }
  0xf0   : > { %v519_v44 = vadd.f32 %v518_v41, %v421_v28  ;;  %v536_v45 = vpop.f32.mrf.mxu1 }
  0xf1   : > { %579 = vst [vmem:[#allocation3 + $0x18] sm:$0xff] %v1382_v40  ;;  %v537_v47 = vadd.f32 %v536_v45, %v436_v42 }
  0xf2   : > { %v1380_v48 = vpack.c.bf16 %v519_v44, %v517_v43 }
  0xf3   : > { %v1383_v49 = vpack.c.bf16 %v537_v47, %v535_v46 }
  0xf4   : > { %577 = vst [vmem:[#allocation3 + $0x10] sm:$0xff] %v1380_v48 }
  0xf5   : > { %580 = vst [vmem:[#allocation3 + $0x8] sm:$0xff] %v1383_v49 }
  0xf6 PF: > { %s1350_s26 = sshll.u32 %s1662_s9, 7  ;;  %v1682_v50 = vmov 0.0   ;;  %vm1683_vm1 = vmmov 0   ;;  %v591_v51 = vld [vmem:[%s2156_s3] sm:$0xf]  ;;  %v1684_v52 = vmov 0  }
  0xf7   : > { %1434 = vmatprep.subr.mxu0 %v1682_v50  ;;  %s582_s27 = sshra.s32 %s1350_s26, 7  ;;  %1442 = vmatprep.mubr.msk.f32.mxu0 %vm1683_vm1, %v1682_v50  ;;  %v1353_v53 = vld.sshfl [vmem:[#allocation2] sm:$0x33 pattern:$0x76325410]  ;;  %vm597_vm2 = vcmask 261120  }
  0xf8   : > { %s1351_s18 = sshll.u32 %s582_s27, 3  ;;  %1551 = vset.pattern.permute.xlu0 %v1684_v52  ;;  %v681_v54 = vcombine.high %v1353_v53, %v1353_v53  ;;  %v590_v59 = vld [vmem:[%s2155_s2] sm:$0xf]  ;;  %vm716_vm3 = vcmask 31744   ;;  %vm765_vm4 = vcmask 1041408   ;;  %s1190_s22 = sld [smem:[#allocation4]] }
  0xf9   : > { %s585_s19 = scalar_lea.vmem %s1798_s28, %s1351_s18  ;;  %594 = vperm.xlu0 %1551, %v591_v51   ;;  %s1375_s23 = sshll.u32 (%p1779_p5), %s1666_s10, 3 }
  0xfa   : > { %v1851_v55 = vld [vmem:[%s585_s19 + $0x30] sm:$0xff]  ;;  %v1853_v56 = vld [vmem:[%s585_s19 + $0x20] sm:$0xff]  ;;  %700 = vxpose.xlu1.c.b16.start.end [1/1] (short) %v681_v54, 128  ;;  %s1216_s24 = sadd.s32 (%p1779_p5), %s1662_s9, %s1375_s23 }
  0xfb   : > { %1435 = vmatpush3.msra.mxu0 %v1851_v55  ;;  %v1856_v57 = vld [vmem:[%s585_s19 + $0x10] sm:$0xff]  ;;  %v1859_v58 = vld [vmem:[%s585_s19] sm:$0xff]  ;;  %v1554_v38 = vld [vmem:[#allocation3 + $0x14] ss:$-16 sps:$4 sm:$0xff]   ;;  %s1376_s25 = sshll.u32 (%p1779_p5), %s1216_s24, 3 }
  0xfc   : > { %1436 = vmatprep.subr.mxu0 %v1682_v50  ;;  %s1218_s29 = scalar_lea.vmem (%p1779_p5), %s2161_s8, %s1376_s25 }
  0xfd   : > { %1437 = vmatpush3.msra.mxu0 %v1853_v56 }
  0xfe   : > { %1438 = vmatprep.subr.mxu0 %v1682_v50 }
  0xff   : > { %1439 = vmatpush3.msra.mxu0 %v1856_v57 }
 0x100   : > { %1440 = vmatprep.subr.mxu0 %v1682_v50 }
 0x101   : > { %1441 = vmatpush3.msra.mxu0 %v1859_v58 }
 0x102   : > { %1443 = vmatmul.mubr.msk.f32.vlgmr.msra.gmra.mxu0 %vm597_vm2, %v590_v59 }
 0x103   : > { %1172 = vmatprep.mubr.bf16.mxu0 %v1554_v38 }
 0x117   : > { %684 = vxpose.xlu0.c.b16.start.end [1/1] (short) %v1353_v53, 128 }
 0x15c   : > { %v708_v8 = vpop.trf.xlu1 }
 0x160   : > { %v709_v10 = vpop.trf.xlu1 }
 0x164   : > { %v710_v12 = vpop.trf.xlu1 }
 0x168   : > { %v711_v13 = vpop.trf.xlu1 }
 0x16c   : > { %v712_v14 = vpop.trf.xlu1 }
 0x170   : > { %v713_v15 = vpop.trf.xlu1 }
 0x174   : > { %v595_v60 = vpop.permute.xlu0 %594  ;;  %v714_v16 = vpop.trf.xlu1 }
 0x178   : > { %v715_v17 = vpop.trf.xlu1 }
 0x179   : > { %v692_v61 = vpop.trf.xlu0 }
 0x17a   : > { %1447 = vmatprep.mubr.msk.bf16.mxu1 %vm716_vm3, %v692_v61 }
 0x17d   : > { %v693_v62 = vpop.trf.xlu0 }
 0x181   : > { %v694_v63 = vpop.trf.xlu0 }
 0x185   : > { %v695_v5 = vpop.trf.xlu0 }
 0x189   : > { %v696_v6 = vpop.trf.xlu0 }
 0x18d   : > { %v697_v7 = vpop.trf.xlu0 }
 0x191   : > { %v698_v9 = vpop.trf.xlu0 }
 0x195   : > { %v699_v11 = vpop.trf.xlu0 }
 0x1c2   : > { %v667_v0 = vpop.f32.mrf.mxu0 }
 0x1c3   : > { %v668_v1 = vadd.f32 %v667_v0, %v595_v60 }
 0x1c4   : > { %v1444_v2 = vpop.f32.mrf.mxu0 }
 0x1c5   : > { %v672_v3 = vpack.c.bf16 %v668_v1, %v668_v1 }
 0x1c7   : > { %1487 = vmatprep.subr.msk.bf16.mxu1 %vm765_vm4, %v672_v3  ;;  %v767_v4 = vsel %vm765_vm4, %v672_v3, 0 }
 0x1c8   : > { %1446 = vmatpush3.bf16.msra.mxu1 %v767_v4 }
 0x1cb   : > { %1448 = vmatmul.mubr.msk.bf16.vlgmr.msra.gmra.mxu1 %vm716_vm3, %v693_v62 }
 0x1cc   : > { %1451 = vmatprep.mubr.msk.bf16.mxu1 %vm716_vm3, %v694_v63 }
 0x1d3   : > { %1452 = vmatmul.mubr.msk.bf16.gmra.mxu1 %vm716_vm3, %v695_v5 }
 0x1d4   : > { %1455 = vmatprep.mubr.msk.bf16.mxu1 %vm716_vm3, %v696_v6 }
 0x1db   : > { %1456 = vmatmul.mubr.msk.bf16.gmra.mxu1 %vm716_vm3, %v697_v7 }
 0x1dc   : > { %1459 = vmatprep.mubr.msk.bf16.mxu1 %vm716_vm3, %v698_v9 }
 0x1e3   : > { %1460 = vmatmul.mubr.msk.bf16.gmra.mxu1 %vm716_vm3, %v699_v11 }
 0x1e4   : > { %1463 = vmatprep.mubr.msk.bf16.mxu1 %vm716_vm3, %v708_v8 }
 0x1eb   : > { %1464 = vmatmul.mubr.msk.bf16.gmra.mxu1 %vm716_vm3, %v709_v10 }
 0x1ec   : > { %1467 = vmatprep.mubr.msk.bf16.mxu1 %vm716_vm3, %v710_v12 }
 0x1f3   : > { %1468 = vmatmul.mubr.msk.bf16.gmra.mxu1 %vm716_vm3, %v711_v13 }
 0x1f4   : > { %1471 = vmatprep.mubr.msk.bf16.mxu1 %vm716_vm3, %v712_v14 }
 0x1fb   : > { %1472 = vmatmul.mubr.msk.bf16.gmra.mxu1 %vm716_vm3, %v713_v15 }
 0x1fc   : > { %1475 = vmatprep.mubr.msk.bf16.mxu1 %vm716_vm3, %v714_v16 }
 0x203   : > { %1476 = vmatmul.mubr.msk.bf16.gmra.mxu1 %vm716_vm3, %v715_v17 }
 0x28b   : > { %v1882_v18 = vpop.f32.mrf.mxu1 }
 0x28d   : > { %v1884_v19 = vpop.f32.mrf.mxu1 }
 0x28f   : > { %v1886_v20 = vpop.f32.mrf.mxu1 }
 0x291   : > { %v1888_v21 = vpop.f32.mrf.mxu1 }
 0x293   : > { %v1890_v22 = vpop.f32.mrf.mxu1 }
 0x294   : > { %v932_v46 = vmax.f32 %v1882_v18, %v1890_v22 }
 0x295   : > { %v1892_v23 = vpop.f32.mrf.mxu1 }
 0x296   : > { %v930_v47 = vmax.f32 %v1884_v19, %v1892_v23 }
 0x297   : > { %v1894_v24 = vpop.f32.mrf.mxu1 }
 0x298   : > { %v933_v44 = vmax.f32 %v1886_v20, %v1894_v24 }
 0x299   : > { %v1896_v25 = vpop.f32.mrf.mxu1 }
 0x29a   : > { %v931_v48 = vmax.f32 %v1888_v21, %v1896_v25 }
 0x29b   : > { %v1898_v26 = vpop.f32.mrf.mxu1 }
 0x29c   : > { %v936_v51 = vmax.f32 %v932_v46, %v1898_v26 }
 0x29d   : > { %v1900_v27 = vpop.f32.mrf.mxu1 }
 0x29e   : > { %v934_v52 = vmax.f32 %v930_v47, %v1900_v27 }
 0x29f   : > { %v1902_v28 = vpop.f32.mrf.mxu1 }
 0x2a0   : > { %v937_v49 = vmax.f32 %v933_v44, %v1902_v28 }
 0x2a1   : > { %v1904_v29 = vpop.f32.mrf.mxu1 }
 0x2a2   : > { %v935_v53 = vmax.f32 %v931_v48, %v1904_v29 }
 0x2a3   : > { %v1906_v30 = vpop.f32.mrf.mxu1 }
 0x2a4   : > { %v940_v60 = vmax.f32 %v936_v51, %v1906_v30 }
 0x2a5   : > { %v1908_v31 = vpop.f32.mrf.mxu1 }
 0x2a6   : > { %v938_v61 = vmax.f32 %v934_v52, %v1908_v31 }
 0x2a7   : > { %v1910_v32 = vpop.f32.mrf.mxu1 }
 0x2a8   : > { %v941_v54 = vmax.f32 %v937_v49, %v1910_v32 }
 0x2a9   : > { %v1912_v33 = vpop.f32.mrf.mxu1 }
 0x2aa   : > { %v939_v62 = vmax.f32 %v935_v53, %v1912_v33 }
 0x2ab   : > { %v1914_v34 = vpop.f32.mrf.mxu1 }
 0x2ac   : > { %v944_v1 = vmax.f32 %v940_v60, %v1914_v34 }
 0x2ad   : > { %v1916_v35 = vpop.f32.mrf.mxu1 }
 0x2ae   : > { %v942_v2 = vmax.f32 %v938_v61, %v1916_v35 }
 0x2af   : > { %v1918_v36 = vpop.f32.mrf.mxu1 }
 0x2b0   : > { %v945_v63 = vmax.f32 %v941_v54, %v1918_v36 }
 0x2b1   : > { %v1920_v37 = vpop.f32.mrf.mxu1 }
 0x2b2   : > { %v943_v3 = vmax.f32 %v939_v62, %v1920_v37 }
 0x2b3   : > { %v1922_v39 = vpop.f32.mrf.mxu1 }
 0x2b4   : > { %v948_v6 = vmax.f32 %v944_v1, %v1922_v39 }
 0x2b5   : > { %v1924_v40 = vpop.f32.mrf.mxu1 }
 0x2b6   : > { %v946_v7 = vmax.f32 %v942_v2, %v1924_v40 }
 0x2b7   : > { %v1926_v41 = vpop.f32.mrf.mxu1 }
 0x2b8   : > { %v949_v4 = vmax.f32 %v945_v63, %v1926_v41 }
 0x2b9   : > { %v1928_v42 = vpop.f32.mrf.mxu1 }
 0x2ba   : > { %v947_v8 = vmax.f32 %v943_v3, %v1928_v42 }
 0x2bb   : > { %v1930_v43 = vpop.f32.mrf.mxu1 }
 0x2bc   : > { %v952_v11 = vmax.f32 %v948_v6, %v1930_v43 }
 0x2bd   : > { %v1934_v45 = vpop.f32.mrf.mxu1 }
 0x2be   : > { %v950_v12 = vmax.f32 %v946_v7, %v1934_v45 }
 0x2bf   : > { %v1943_v50 = vpop.f32.mrf.mxu1 }
 0x2c0   : > { %v953_v9 = vmax.f32 %v949_v4, %v1943_v50 }
 0x2c1   : > { %v1949_v59 = vpop.f32.mrf.mxu1 }
 0x2c2   : > { %v951_v13 = vmax.f32 %v947_v8, %v1949_v59 }
 0x2c3   : > { %v1955_v0 = vpop.f32.mrf.mxu1 }
 0x2c4   : > { %v956_v16 = vmax.f32 %v952_v11, %v1955_v0 }
 0x2c5   : > { %v1961_v5 = vpop.f32.mrf.mxu1 }
 0x2c6   : > { %v954_v17 = vmax.f32 %v950_v12, %v1961_v5 }
 0x2c7   : > { %v1967_v10 = vpop.f32.mrf.mxu1 }
 0x2c8   : > { %v957_v14 = vmax.f32 %v953_v9, %v1967_v10 }
 0x2c9   : > { %v1973_v15 = vpop.f32.mrf.mxu1 }
 0x2ca   : > { %v955_v38 = vmax.f32 %v951_v13, %v1973_v15  ;;  %v959_v44 = vmax.f32 %v956_v16, %v957_v14 }
 0x2cc   : > { %v958_v46 = vmax.f32 %v954_v17, %v955_v38 }
 0x2ce   : > { %v960_v47 = vmax.f32 %v958_v46, %v959_v44 }
 0x2d0   : > { %v961_v48 = vrot.slane %v960_v47, 4 }
 0x2d2   : > { %v962_v49 = vmax.f32 %v960_v47, %v961_v48 }
 0x2d4   : > { %v963_v51 = vrot.slane %v962_v49, 2 }
 0x2d6   : > { %v964_v52 = vmax.f32 %v962_v49, %v963_v51 }
 0x2d8   : > { %v965_v53 = vrot.slane %v964_v52, 1 }
 0x2da   : > { %v1978_v54 = vmax.f32 %v964_v52, %v965_v53 }
 0x2dc   : > { %v967_v60 = vsub.f32 %v1884_v19, %v1978_v54  ;;  %v968_v61 = vsub.f32 %v1888_v21, %v1978_v54  ;;  %v969_v62 = vsub.f32 %v1882_v18, %v1978_v54  ;;  %v970_v63 = vsub.f32 %v1886_v20, %v1978_v54 }
 0x2dd   : > { %v971_v1 = vsub.f32 %v1892_v23, %v1978_v54  ;;  %v972_v4 = vsub.f32 %v1896_v25, %v1978_v54  ;;  %v975_v19 = vsub.f32 %v1900_v27, %v1978_v54  ;;  %v976_v21 = vsub.f32 %v1904_v29, %v1978_v54 }
 0x2de   : > { %v999_v2 = vmul.f32 1.442695, %v967_v60  ;;  %v1001_v3 = vmul.f32 1.442695, %v968_v61  ;;  %v1003_v6 = vmul.f32 1.442695, %v969_v62  ;;  %v973_v20 = vsub.f32 %v1890_v22, %v1978_v54 }
 0x2df   : > { %v1005_v18 = vmul.f32 1.442695, %v970_v63  ;;  %v1007_v7 = vmul.f32 1.442695, %v971_v1  ;;  %v1009_v23 = vmul.f32 1.442695, %v972_v4  ;;  %v974_v25 = vsub.f32 %v1894_v24, %v1978_v54 }
 0x2e0   : > { %1558 = vpow2.f32 %v999_v2  ;;  %v1015_v8 = vmul.f32 1.442695, %v975_v19  ;;  %v1017_v9 = vmul.f32 1.442695, %v976_v21  ;;  %v977_v27 = vsub.f32 %v1898_v26, %v1978_v54 }
 0x2e1   : > { %1560 = vpow2.f32 %v1001_v3  ;;  %v1011_v29 = vmul.f32 1.442695, %v973_v20  ;;  %v983_v11 = vsub.f32 %v1916_v35, %v1978_v54  ;;  %v984_v22 = vsub.f32 %v1920_v37, %v1978_v54 }
 0x2e2   : > { %1562 = vpow2.f32 %v1003_v6  ;;  %v1013_v12 = vmul.f32 1.442695, %v974_v25  ;;  %v985_v24 = vsub.f32 %v1914_v34, %v1978_v54  ;;  %v986_v13 = vsub.f32 %v1918_v36, %v1978_v54 }
 0x2e3   : > { %1564 = vpow2.f32 %v1005_v18  ;;  %v1019_v14 = vmul.f32 1.442695, %v977_v27  ;;  %v1031_v26 = vmul.f32 1.442695, %v983_v11  ;;  %v978_v35 = vsub.f32 %v1902_v28, %v1978_v54 }
 0x2e4   : > { %1566 = vpow2.f32 %v1007_v7  ;;  %v1033_v17 = vmul.f32 1.442695, %v984_v22  ;;  %v1035_v37 = vmul.f32 1.442695, %v985_v24  ;;  %v979_v44 = vsub.f32 %v1908_v31, %v1978_v54 }
 0x2e5   : > { %1568 = vpow2.f32 %v1009_v23  ;;  %v1037_v34 = vmul.f32 1.442695, %v986_v13  ;;  %v980_v47 = vsub.f32 %v1912_v33, %v1978_v54  ;;  %v1021_v28 = vmul.f32 1.442695, %v978_v35 }
 0x2e6   : > { %1570 = vpow2.f32 %v1015_v8  ;;  %v981_v31 = vsub.f32 %v1906_v30, %v1978_v54  ;;  %v982_v52 = vsub.f32 %v1910_v32, %v1978_v54  ;;  %v1023_v53 = vmul.f32 1.442695, %v979_v44 }
 0x2e7   : > { %1572 = vpow2.f32 %v1017_v9  ;;  %v995_v61 = vsub.f32 %v1961_v5, %v1978_v54  ;;  %v996_v30 = vsub.f32 %v1973_v15, %v1978_v54  ;;  %v1025_v63 = vmul.f32 1.442695, %v980_v47 }
 0x2e8   : > { %1574 = vpow2.f32 %v1011_v29  ;;  %v997_v32 = vsub.f32 %v1955_v0, %v1978_v54  ;;  %v998_v3 = vsub.f32 %v1967_v10, %v1978_v54  ;;  %v1027_v4 = vmul.f32 1.442695, %v981_v31 }
 0x2e9   : > { %1576 = vpow2.f32 %v1013_v12  ;;  %v1029_v5 = vmul.f32 1.442695, %v982_v52  ;;  %v1055_v21 = vmul.f32 1.442695, %v995_v61  ;;  %v1057_v18 = vmul.f32 1.442695, %v996_v30 }
 0x2ea   : > { %1578 = vpow2.f32 %v1019_v14  ;;  %v993_v0 = vsub.f32 %v1930_v43, %v1978_v54  ;;  %v1059_v10 = vmul.f32 1.442695, %v997_v32  ;;  %v994_v23 = vsub.f32 %v1943_v50, %v1978_v54 }
 0x2eb   : > { %1580 = vpow2.f32 %v1031_v26  ;;  %v1061_v8 = vmul.f32 1.442695, %v998_v3  ;;  %v987_v29 = vsub.f32 %v1924_v40, %v1978_v54  ;;  %v991_v50 = vsub.f32 %v1934_v45, %v1978_v54 }
 0x2ec   : > { %1582 = vpow2.f32 %v1033_v17  ;;  %v992_v22 = vsub.f32 %v1949_v59, %v1978_v54  ;;  %v1051_v12 = vmul.f32 1.442695, %v993_v0  ;;  %v1053_v13 = vmul.f32 1.442695, %v994_v23 }
 0x2ed   : > { %v2010_v16 = vpop.eup %1558  ;;  %1584 = vpow2.f32 %v1035_v37  ;;  %v988_v35 = vsub.f32 %v1928_v42, %v1978_v54  ;;  %v1039_v45 = vmul.f32 1.442695, %v987_v29  ;;  %v989_v44 = vsub.f32 %v1922_v39, %v1978_v54 }
 0x2ee   : > { %v2014_v38 = vpop.eup %1560  ;;  %1586 = vpow2.f32 %v1037_v34  ;;  %v1047_v34 = vmul.f32 1.442695, %v991_v50  ;;  %v1049_v47 = vmul.f32 1.442695, %v992_v22 }
 0x2ef   : > { %v1063_v36 = vadd.f32 %v2014_v38, %v2010_v16  ;;  %v2020_v46 = vpop.eup %1562  ;;  %1588 = vpow2.f32 %v1021_v28  ;;  %v1041_v42 = vmul.f32 1.442695, %v988_v35 }
 0x2f0   : > { %v2025_v49 = vpop.eup %1564  ;;  %1590 = vpow2.f32 %v1023_v53  ;;  %v1043_v53 = vmul.f32 1.442695, %v989_v44 }
 0x2f1   : > { %v1064_v48 = vadd.f32 %v2020_v46, %v1063_v36  ;;  %v2029_v51 = vpop.eup %1566  ;;  %1592 = vpow2.f32 %v1025_v63  ;;  %v990_v36 = vsub.f32 %v1926_v41, %v1978_v54 }
 0x2f2   : > { %v2034_v33 = vpop.eup %1568  ;;  %1594 = vpow2.f32 %v1027_v4 }
 0x2f3   : > { %v1065_v60 = vadd.f32 %v2025_v49, %v1064_v48  ;;  %v2038_v62 = vpop.eup %1570  ;;  %1596 = vpow2.f32 %v1029_v5  ;;  %v1045_v61 = vmul.f32 1.442695, %v990_v36 }
 0x2f4   : > { %v2043_v2 = vpop.eup %1572  ;;  %1598 = vpow2.f32 %v1055_v21 }
 0x2f5   : > { %v1066_v1 = vadd.f32 %v2029_v51, %v1065_v60  ;;  %v1108_v15 = vpack.c.bf16 %v2043_v2, %v2038_v62  ;;  %v2052_v19 = vpop.eup %1574  ;;  %1600 = vpow2.f32 %v1057_v18 }
 0x2f6   : > { %v2055_v20 = vpop.eup %1576  ;;  %1602 = vpow2.f32 %v1059_v10 }
 0x2f7   : > { %v1067_v6 = vadd.f32 %v2034_v33, %v1066_v1  ;;  %v2062_v9 = vpop.eup %1578  ;;  %1604 = vpow2.f32 %v1061_v8 }
 0x2f8   : > { %v2064_v27 = vpop.eup %1580  ;;  %1606 = vpow2.f32 %v1051_v12 }
 0x2f9   : > { %v1068_v7 = vadd.f32 %v2052_v19, %v1067_v6  ;;  %v2069_v11 = vpop.eup %1582  ;;  %1608 = vpow2.f32 %v1053_v13 }
 0x2fa   : > { %v2075_v24 = vpop.eup %1584  ;;  %v1112_v40 = vpack.c.bf16 %v2069_v11, %v2064_v27  ;;  %1610 = vpow2.f32 %v1039_v45 }
 0x2fb   : > { %v1069_v25 = vadd.f32 %v2055_v20, %v1068_v7  ;;  %v2080_v26 = vpop.eup %1586  ;;  %1612 = vpow2.f32 %v1047_v34 }
 0x2fc   : > { %v1113_v59 = vpack.c.bf16 %v2080_v26, %v2075_v24  ;;  %v1589_v37 = vpop.eup %1588  ;;  %1614 = vpow2.f32 %v1049_v47 }
 0x2fd   : > { %v1070_v43 = vadd.f32 %v2038_v62, %v1069_v25  ;;  %v1591_v48 = vpop.eup %1590  ;;  %1616 = vpow2.f32 %v1041_v42  ;;  %v1109_v13 = vpack.c.bf16 %v1589_v37, %v2062_v9  ;;  %v1106_v42 = vpack.c.bf16 %v2034_v33, %v2029_v51 }
 0x2fe   : > { %v1593_v52 = vpop.eup %1592  ;;  %1618 = vpow2.f32 %v1043_v53  ;;  %v1105_v62 = vpack.c.bf16 %v2025_v49, %v2020_v46  ;;  %v1104_v51 = vpack.c.bf16 %v2014_v38, %v2010_v16 }
 0x2ff   : > { %v1071_v14 = vadd.f32 %v2043_v2, %v1070_v43  ;;  %v1595_v60 = vpop.eup %1594  ;;  %1620 = vpow2.f32 %v1045_v61  ;;  %v1110_v8 = vpack.c.bf16 %v1593_v52, %v1591_v48 }
 0x300   : > { %v1597_v39 = vpop.eup %1596 }
 0x301   : > { %v1072_v17 = vadd.f32 %v2062_v9, %v1071_v14  ;;  %v1599_v63 = vpop.eup %1598  ;;  %v1111_v4 = vpack.c.bf16 %v1597_v39, %v1595_v60 }
 0x302   : > { %v1601_v32 = vpop.eup %1600 }
 0x303   : > { %v1073_v28 = vadd.f32 %v1589_v37, %v1072_v17  ;;  %v1603_v41 = vpop.eup %1602  ;;  %v1118_v7 = vpack.c.bf16 %v1601_v32, %v1599_v63 }
 0x304   : > { %v1605_v3 = vpop.eup %1604 }
 0x305   : > { %v1074_v31 = vadd.f32 %v1591_v48, %v1073_v28  ;;  %v1119_v6 = vpack.c.bf16 %v1605_v3, %v1603_v41  ;;  %v1607_v21 = vpop.eup %1606  ;;  %v1107_v28 = vpack.c.bf16 %v2055_v20, %v2052_v19  ;;  %v1552_v19 = vld [vmem:[#allocation3 + $0x10] ss:$-16 sps:$4 sm:$0xff]   ;;  %v1555_v20 = vld [vmem:[#allocation3 + $0x1c] ss:$-16 sps:$4 sm:$0xff]  }
 0x306   : > { %v1609_v0 = vpop.eup %1608 }
 0x307   : > { %v1075_v30 = vadd.f32 %v1593_v52, %v1074_v31  ;;  %1406 = vmatprep.subr.bf16.mxu0 %v1119_v6  ;;  %v1611_v23 = vpop.eup %1610  ;;  %v1117_v43 = vpack.c.bf16 %v1609_v0, %v1607_v21 }
 0x308   : > { %1407 = vmatpush3.bf16.msra.mxu0 %v1111_v4  ;;  %v1613_v25 = vpop.eup %1612 }
 0x309   : > { %v1076_v1 = vadd.f32 %v1595_v60, %v1075_v30  ;;  %1408 = vmatprep.subr.bf16.mxu0 %v1118_v7  ;;  %v1615_v50 = vpop.eup %1614 }
 0x30a   : > { %v1617_v12 = vpop.eup %1616  ;;  %v1116_v45 = vpack.c.bf16 %v1615_v50, %v1613_v25 }
 0x30b   : > { %v1077_v54 = vadd.f32 %v1597_v39, %v1076_v1  ;;  %v1619_v14 = vpop.eup %1618  ;;  %v1114_v9 = vpack.c.bf16 %v1617_v12, %v1611_v23 }
 0x30c   : > { %1409 = vmatpush3.bf16.msra.mxu0 %v1110_v8  ;;  %v1621_v17 = vpop.eup %1620 }
 0x30d   : > { %v1078_v5 = vadd.f32 %v2064_v27, %v1077_v54  ;;  %1410 = vmatprep.subr.bf16.mxu0 %v1117_v43  ;;  %v1115_v36 = vpack.c.bf16 %v1621_v17, %v1619_v14 }
 0x30f   : > { %v1079_v18 = vadd.f32 %v2069_v11, %v1078_v5 }
 0x310   : > { %1411 = vmatpush3.bf16.msra.mxu0 %v1109_v13 }
 0x311   : > { %v1080_v10 = vadd.f32 %v2075_v24, %v1079_v18  ;;  %1412 = vmatprep.subr.bf16.mxu0 %v1116_v45  ;;  %v1557_v24 = vld [vmem:[#allocation3 + $0x18] ss:$-16 sps:$4 sm:$0xff]  }
 0x313   : > { %v1081_v29 = vadd.f32 %v2080_v26, %v1080_v10 }
 0x314   : > { %1413 = vmatpush3.bf16.msra.mxu0 %v1108_v15 }
 0x315   : > { %v1082_v22 = vadd.f32 %v1611_v23, %v1081_v29  ;;  %1414 = vmatprep.subr.bf16.mxu0 %v1115_v36 }
 0x317   : > { %v1083_v35 = vadd.f32 %v1617_v12, %v1082_v22 }
 0x318   : > { %1415 = vmatpush3.bf16.msra.mxu0 %v1107_v28 }
 0x319   : > { %v1084_v44 = vadd.f32 %v1619_v14, %v1083_v35  ;;  %1416 = vmatprep.subr.bf16.mxu0 %v1114_v9 }
 0x31b   : > { %v1085_v34 = vadd.f32 %v1621_v17, %v1084_v44 }
 0x31c   : > { %1417 = vmatpush3.bf16.msra.mxu0 %v1106_v42 }
 0x31d   : > { %v1086_v47 = vadd.f32 %v1613_v25, %v1085_v34  ;;  %1418 = vmatprep.subr.bf16.mxu0 %v1113_v59 }
 0x31f   : > { %v1087_v48 = vadd.f32 %v1615_v50, %v1086_v47 }
 0x320   : > { %1419 = vmatpush3.bf16.msra.mxu0 %v1105_v62 }
 0x321   : > { %v1088_v37 = vadd.f32 %v1607_v21, %v1087_v48  ;;  %1420 = vmatprep.subr.bf16.mxu0 %v1112_v40  ;;  %v1195_v40 = vstv %s1190_s22 }
 0x323   : > { %v1089_v31 = vadd.f32 %v1609_v0, %v1088_v37 }
 0x324   : > { %1421 = vmatpush3.bf16.msra.mxu0 %v1104_v51 }
 0x325   : > { %v1090_v52 = vadd.f32 %v1599_v63, %v1089_v31 }
 0x327   : > { %v1091_v2 = vadd.f32 %v1601_v32, %v1090_v52  ;;  %1173 = vmatmul.mubr.bf16.vlgmr.msra.gmra.mxu0 %v1552_v19 }
 0x328   : > { %1180 = vmatprep.mubr.bf16.mxu0 %v1555_v20 }
 0x329   : > { %v1092_v15 = vadd.f32 %v1603_v41, %v1091_v2 }
 0x32b   : > { %v1093_v33 = vadd.f32 %v1605_v3, %v1092_v15 }
 0x32d   : > { %v1094_v26 = vrot.slane %v1093_v33, 4 }
 0x32f   : > { %1181 = vmatmul.mubr.bf16.gmra.mxu0 %v1557_v24  ;;  %v1095_v46 = vadd.f32 %v1094_v26, %v1093_v33 }
 0x331   : > { %v1096_v49 = vrot.slane %v1095_v46, 2 }
 0x333   : > { %v1097_v59 = vadd.f32 %v1096_v49, %v1095_v46 }
 0x335   : > { %v1098_v53 = vrot.slane %v1097_v59, 1 }
 0x337   : > { %v1099_v60 = vadd.f32 %v1098_v53, %v1097_v59 }
 0x339   : > { %1622 = vrcp.f32 %v1099_v60 }
 0x346   : > { %v1623_v38 = vpop.eup %1622 }
 0x3e7   : > { %v1422_v27 = vpop.f32.mrf.mxu0 }
 0x3e9   : > { %v1423_v11 = vpop.f32.mrf.mxu0 }
 0x3ea   : > { %v1424_v16 = vadd.f32 %v1423_v11, %v1422_v27 }
 0x3eb   : > { %v1425_v61 = vpop.f32.mrf.mxu0 }
 0x3ec   : > { %v1191_v30 = vmul.f32 %v1623_v38, %v1424_v16 }
 0x3ed   : > { %v1426_v39 = vpop.f32.mrf.mxu0 }
 0x3ee   : > { %v1196_v63 = vmul.f32 %v1195_v40, %v1191_v30  ;;  %v1427_v1 = vadd.f32 %v1426_v39, %v1425_v61 }
 0x3ef   : > { %v1428_v32 = vpop.f32.mrf.mxu0 }
 0x3f0   : > { %v1200_v41 = vadd.f32 %v1196_v63, %v1859_v58  ;;  %v1192_v54 = vmul.f32 %v1623_v38, %v1427_v1 }
 0x3f1   : > { %v1429_v3 = vpop.f32.mrf.mxu0 }
 0x3f2   : > { %1204 = vst [vmem:[%s1800_s15] sm:$0xff] %v1200_v41  ;;  %v1197_v4 = vmul.f32 %v1195_v40, %v1192_v54  ;;  %v1430_v5 = vadd.f32 %v1429_v3, %v1428_v32 }
 0x3f3   : > { %v1431_v6 = vpop.f32.mrf.mxu0 }
 0x3f4   : > { %v1201_v21 = vadd.f32 %v1197_v4, %v1856_v57  ;;  %v1193_v18 = vmul.f32 %v1623_v38, %v1430_v5 }
 0x3f5   : > { %v1432_v7 = vpop.f32.mrf.mxu0 }
 0x3f6   : > { %1205 = vst [vmem:[%s1800_s15 + $0x8] sm:$0xff] %v1201_v21  ;;  %v1198_v0 = vmul.f32 %v1195_v40, %v1193_v18  ;;  %v1433_v10 = vadd.f32 %v1432_v7, %v1431_v6 }
 0x3f8   : > { %v1202_v23 = vadd.f32 %v1198_v0, %v1853_v56  ;;  %v1194_v8 = vmul.f32 %v1623_v38, %v1433_v10 }
 0x3f9   : > { %v1253_v57 = vld [vmem:[%s1800_s15] sm:$0xff] (%p1779_p5) }
 0x3fa   : > { %1206 = vst [vmem:[%s1800_s15 + $0x10] sm:$0xff] %v1202_v23  ;;  %v1199_v25 = vmul.f32 %v1195_v40, %v1194_v8  ;;  %1214 = sbr.rel (!%p1779_p5) target bundleno = 1031 (0x407), region = 60  ;;  %1254 = vst [vmem:[%s1218_s29] sm:$0xff] (%p1779_p5), %v1253_v57 }
 0x3fc   : > { %v1203_v58 = vadd.f32 %v1199_v25, %v1851_v55 }
 0x3fd   : > { %v1255_v29 = vld [vmem:[%s1800_s15 + $0x8] sm:$0xff] (%p1779_p5) }
 0x3fe   : > { %1207 = vst [vmem:[%s1800_s15 + $0x18] sm:$0xff] %v1203_v58  ;;  %1256 = vst [vmem:[%s1218_s29 + $0x10] sm:$0xff] (%p1779_p5), %v1255_v29 }
 0x401   : > { %v1257_v56 = vld [vmem:[%s1800_s15 + $0x10] sm:$0xff] }
 0x402   : > { %1258 = vst [vmem:[%s1218_s29 + $0x20] sm:$0xff] %v1257_v56 }
 0x405   : > { %v1259_v43 = vld [vmem:[%s1800_s15 + $0x18] sm:$0xff] }
 0x406   : > { %1260 = vst [vmem:[%s1218_s29 + $0x30] sm:$0xff] %v1259_v43 }
 0x407 PF: > { %s19_s13 = sadd.s32 1, %s1678_s13   ;;  %s2163_s29 = smov %s1658_s30 }
 0x408   : > { %p16_p11 = scmp.ge.s32.totalorder %s19_s13, 6   ;;  %s2164_s30 = smov %s1790_s21 }
 0x409   : > { %s2165_s9 = smov %s1670_s11  ;;  %s2166_s10 = smov %s1674_s12 }
 0x40a   : > { %s2167_s11 = smov %s2170_s0  ;;  %s2168_s12 = smov %s2174_s14 }
 0x40b   :  { %18 = sbr.rel (!%p16_p11) target bundleno = 6 (0x6), region = 125 }

</bundles_post_ra>
